<compile_context>
chip_gen: v7x
topology: tpu7x:2x2x1
jax: 0.10.0
libtpu: 0.0.40
codegen_flags: <defaults>
</compile_context>

<pallas_src>
from functools import partial

import jax
import jax.numpy as jnp
from jax.experimental import pallas as pl
from jax.experimental.pallas import tpu as pltpu


def lstm_recurrence_kernel(x_ref, wih_ref, whh_ref, b_ref, h_out_ref):
    """Full LSTM recurrence for one batch-block.

    x_ref     : (L, Bblk, input_size)  f32   time-major inputs
    wih_ref   : (input_size, 4H)       f32   W_ih^T, i/f/o columns pre-scaled 0.5
    whh_ref   : (H, 4H)                f32/bf16  W_hh^T, same column scaling
    b_ref     : (1, 4H)                f32   b_ih + b_hh, same column scaling
    h_out_ref : (Bblk, H)              f32   final hidden state h_L per row
    """
    L, bblk, in_sz = x_ref.shape
    H = whh_ref.shape[0]

    wih = wih_ref[...]            # (in, 4H)  f32, loop-invariant
    bias = b_ref[...]             # (1, 4H)   f32, loop-invariant
    whh = whh_ref[...]            # (H, 4H)   resident in vregs across the loop
    # TODO(synk): hold whh in the MXU via pltpu.matmul_push_rhs and drive the
    # per-step product with matmul_acc_lhs/matmul_pop instead of jnp.dot.

    # h0 = c0 = 0 (matches self.hidden in the module); state lives in vregs.
    h = jnp.zeros((bblk, H), jnp.float32)
    c = jnp.zeros((bblk, H), jnp.float32)

    # Fully unrolled recurrence (L is static and small).
    for t in range(L):
        xt = x_ref[t].astype(jnp.float32)                    # (Bblk, in)
        if in_sz == 1:
            # VPU broadcast instead of a wasted K=1 MXU pass.
            gin = xt * wih + bias                             # (Bblk, 4H)
        else:
            gin = jnp.dot(xt, wih,
                          preferred_element_type=jnp.float32) + bias

        gates = gin + jnp.dot(h.astype(whh.dtype), whh,
                              preferred_element_type=jnp.float32)  # (Bblk,4H)

        # Single full-width EUP pass; sigmoids recovered as 0.5*(1+tanh(z/2))
        # (the 0.5 input scale is already folded into the weights/bias).
        tg = jnp.tanh(gates)
        i_g = 0.5 * (tg[:, 0 * H:1 * H] + 1.0)
        f_g = 0.5 * (tg[:, 1 * H:2 * H] + 1.0)
        g_g = tg[:, 2 * H:3 * H]
        o_g = 0.5 * (tg[:, 3 * H:4 * H] + 1.0)

        c = f_g * c + i_g * g_g
        h = o_g * jnp.tanh(c)

    h_out_ref[...] = h


def _run_recurrence(x, wih_t, whh_t, b, block_b):
    """x: (L, B, in) time-major.  Returns h_L of shape (B, H) in f32."""
    L, B, in_sz = x.shape
    H, H4 = whh_t.shape
    assert B % block_b == 0
    grid = (B // block_b,)
    return pl.pallas_call(
        lstm_recurrence_kernel,
        out_shape=jax.ShapeDtypeStruct((B, H), jnp.float32),
        grid=grid,
        in_specs=[
            pl.BlockSpec((L, block_b, in_sz), lambda i: (0, i, 0)),
            pl.BlockSpec((in_sz, H4), lambda i: (0, 0)),
            pl.BlockSpec((H, H4), lambda i: (0, 0)),
            pl.BlockSpec((1, H4), lambda i: (0, 0)),
        ],
        out_specs=pl.BlockSpec((block_b, H), lambda i: (i, 0)),
        compiler_params=pltpu.CompilerParams(
            dimension_semantics=("parallel",)),
    )(x, wih_t, whh_t, b)


def prepare_params(params, compute_dtype=jnp.bfloat16):
    """One-time weight prep: transposes, bias fusion, sigmoid-scale folding.

    Only the recurrent matrix W_hh^T is cast to compute_dtype (bf16 default,
    the operand on the serial per-step chain); x / W_ih / biases / Linear head
    stay f32.
    """
    w_ih, w_hh, b_ih, b_hh, w_lin, b_lin = params
    H = w_hh.shape[1]
    # sigmoid(z) = 0.5*(1 + tanh(z/2)): scale i, f, o gate columns by 0.5.
    col_scale = jnp.concatenate([
        jnp.full((H,), 0.5, jnp.float32),   # i
        jnp.full((H,), 0.5, jnp.float32),   # f
        jnp.ones((H,), jnp.float32),        # g (plain tanh)
        jnp.full((H,), 0.5, jnp.float32),   # o
    ])
    wih_t = (jnp.asarray(w_ih, jnp.float32).T * col_scale[None, :])       # (in,4H)
    whh_t = (jnp.asarray(w_hh, jnp.float32).T
             * col_scale[None, :]).astype(compute_dtype)                  # (H,4H)
    b = ((jnp.asarray(b_ih, jnp.float32) + jnp.asarray(b_hh, jnp.float32))
         * col_scale).reshape(1, -1)                                      # (1,4H)
    wlin_t = jnp.asarray(w_lin, jnp.float32).T                            # (H,out)
    blin = jnp.asarray(b_lin, jnp.float32).reshape(1, -1)                 # (1,out)
    return (wih_t, whh_t, b, wlin_t, blin)


@partial(jax.jit, static_argnames=("input_size",))
def lstm_forward_pallas(seq, prepared, input_size=1):
    """Module forward: seq (L,) or (L, in) -> pred[-1], shape (output_size,)."""
    wih_t, whh_t, b, wlin_t, blin = prepared
    x = seq.reshape(-1, 1, input_size).astype(jnp.float32)    # (L, 1, in)
    h_last = _run_recurrence(x, wih_t, whh_t, b, block_b=1)   # (1, H)
    pred = h_last @ wlin_t + blin                             # (1, out), f32
    return pred[0]


@partial(jax.jit, static_argnames=("input_size",))
def lstm_forward_pallas_batched(seqs, prepared, input_size=1):
    """B independent sequences: seqs (B, L) or (B, L, in) -> (B, output_size)."""
    wih_t, whh_t, b, wlin_t, blin = prepared
    B = seqs.shape[0]
    x = seqs.reshape(B, -1, input_size).astype(jnp.float32)
    x = jnp.transpose(x, (1, 0, 2))                           # (L, B, in)
    block_b = 8 if B % 8 == 0 else B                          # (8,128)-safe tiles
    h_last = _run_recurrence(x, wih_t, whh_t, b, block_b=block_b)
    return h_last @ wlin_t + blin                             # (B, out)


def lstm_forward_ref(seq, params):
    """Pure-JAX reference matching torch.nn.LSTM + Linear, returns pred[-1]."""
    w_ih, w_hh, b_ih, b_hh, w_lin, b_lin = params
    H = w_hh.shape[1]
    input_size = w_ih.shape[1]
    x = seq.reshape(-1, input_size).astype(jnp.float32)
    h = jnp.zeros((H,), jnp.float32)
    c = jnp.zeros((H,), jnp.float32)
    for t in range(x.shape[0]):
        gates = w_ih @ x[t] + b_ih + w_hh @ h + b_hh           # (4H,)
        i_g = jax.nn.sigmoid(gates[0 * H:1 * H])
        f_g = jax.nn.sigmoid(gates[1 * H:2 * H])
        g_g = jnp.tanh(gates[2 * H:3 * H])
        o_g = jax.nn.sigmoid(gates[3 * H:4 * H])
        c = f_g * c + i_g * g_g
        h = o_g * jnp.tanh(c)
    return w_lin @ h + b_lin                                   # (output_size,)


def init_params(key, input_size, hidden_size, output_size):
    """Deterministic synthetic parameters (same shapes as the nn.Module)."""
    k = jax.random.split(key, 6)
    s = 1.0 / jnp.sqrt(hidden_size)
    w_ih = jax.random.uniform(k[0], (4 * hidden_size, input_size), jnp.float32, -s, s)
    w_hh = jax.random.uniform(k[1], (4 * hidden_size, hidden_size), jnp.float32, -s, s)
    b_ih = jax.random.uniform(k[2], (4 * hidden_size,), jnp.float32, -s, s)
    b_hh = jax.random.uniform(k[3], (4 * hidden_size,), jnp.float32, -s, s)
    w_lin = jax.random.uniform(k[4], (output_size, hidden_size), jnp.float32, -s, s)
    b_lin = jax.random.uniform(k[5], (output_size,), jnp.float32, -s, s)
    return (w_ih, w_hh, b_ih, b_hh, w_lin, b_lin)


if __name__ == "__main__":
    # Small shapes consistent with the module: seq_len=8, input_size=1,
    # hidden_size=32 (4H = 128 = one lane width), output_size=1.
    seq_len, input_size, hidden_size, output_size = 8, 1, 32, 1
    batch = 16

    key = jax.random.PRNGKey(0)
    k_params, k_seq, k_batch = jax.random.split(key, 3)
    params = init_params(k_params, input_size, hidden_size, output_size)
    seq = jax.random.normal(k_seq, (seq_len,), jnp.float32)
    seqs = jax.random.normal(k_batch, (batch, seq_len), jnp.float32)

    ref = lstm_forward_ref(seq, params)

    # f32 recurrent weights: tight tolerance (tanh rewrite is exact in math).
    prepared_f32 = prepare_params(params, compute_dtype=jnp.float32)
    pred = jax.block_until_ready(
        lstm_forward_pallas(seq, prepared_f32, input_size=input_size))
    assert pred.shape == (output_size,)
    assert jnp.allclose(pred, ref, atol=1e-4, rtol=1e-4), (pred, ref)

    # bf16 recurrent weights (default; biggest win on v5e), f32 accumulation.
    prepared_bf16 = prepare_params(params)
    pred_bf16 = jax.block_until_ready(
        lstm_forward_pallas(seq, prepared_bf16, input_size=input_size))
    assert pred_bf16.shape == (output_size,)
    assert jnp.allclose(pred_bf16, ref, atol=5e-2, rtol=5e-2), (pred_bf16, ref)

    # Batched variant: grid over B, two blocks of 8, parallel semantics.
    ref_batch = jnp.stack([lstm_forward_ref(seqs[i], params) for i in range(batch)])
    pred_batch = jax.block_until_ready(
        lstm_forward_pallas_batched(seqs, prepared_f32, input_size=input_size))
    assert pred_batch.shape == (batch, output_size)
    assert jnp.allclose(pred_batch, ref_batch, atol=1e-4, rtol=1e-4), (
        pred_batch, ref_batch)

    print("KERNEL_OK")
</pallas_src>

<mosaic_0001>
module attributes {stable_mosaic.version = 11 : i64} {
  func.func @lstm_recurrence_kernel(%arg0: i32, %arg1: memref<8x1x1xf32, #tpu.memory_space<vmem>>, %arg2: memref<1x128xf32, #tpu.memory_space<vmem>>, %arg3: memref<32x128xf32, #tpu.memory_space<vmem>>, %arg4: memref<1x128xf32, #tpu.memory_space<vmem>>, %arg5: memref<1x32xf32, #tpu.memory_space<vmem>>) attributes {dimension_semantics = [#tpu.dimension_semantics<parallel>], iteration_bounds = array<i64: 1>, scalar_prefetch = 0 : i64, scratch_operands = 0 : i64, tpu.core_type = #tpu.core_type<tc>, window_params = [{transform_indices = @transform_0, window_bounds = array<i64: 8, 1, 1>}, {pipeline_mode = #tpu.pipeline_mode<synchronous>, transform_indices = @transform_1, window_bounds = array<i64: 1, 128>}, {pipeline_mode = #tpu.pipeline_mode<synchronous>, transform_indices = @transform_2, window_bounds = array<i64: 32, 128>}, {pipeline_mode = #tpu.pipeline_mode<synchronous>, transform_indices = @transform_3, window_bounds = array<i64: 1, 128>}, {transform_indices = @transform_4, window_bounds = array<i64: 1, 32>}]} {
    %c0 = arith.constant 0 : index
    %c0_0 = arith.constant 0 : index
    %0 = vector.load %arg2[%c0, %c0_0] : memref<1x128xf32, #tpu.memory_space<vmem>>, vector<1x128xf32>
    %c0_1 = arith.constant 0 : index
    %c0_2 = arith.constant 0 : index
    %1 = vector.load %arg4[%c0_1, %c0_2] : memref<1x128xf32, #tpu.memory_space<vmem>>, vector<1x128xf32>
    %c0_3 = arith.constant 0 : index
    %c0_4 = arith.constant 0 : index
    %2 = vector.load %arg3[%c0_3, %c0_4] : memref<32x128xf32, #tpu.memory_space<vmem>>, vector<32x128xf32>
    %cst = arith.constant 0.000000e+00 : f32
    %3 = vector.broadcast %cst : f32 to vector<1x32xf32>
    %cst_5 = arith.constant 0.000000e+00 : f32
    %4 = vector.broadcast %cst_5 : f32 to vector<1x32xf32>
    %c0_6 = arith.constant 0 : index
    %c0_7 = arith.constant 0 : index
    %c0_8 = arith.constant 0 : index
    %5 = vector.load %arg1[%c0_6, %c0_7, %c0_8] : memref<8x1x1xf32, #tpu.memory_space<vmem>>, vector<1x1x1xf32>
    %6 = vector.shape_cast %5 : vector<1x1x1xf32> to vector<1x1xf32>
    %7 = vector.broadcast %6 : vector<1x1xf32> to vector<1x128xf32>
    %8 = arith.mulf %7, %0 : vector<1x128xf32>
    %9 = arith.addf %8, %1 : vector<1x128xf32>
    %cst_9 = arith.constant dense<0.000000e+00> : vector<1x128xf32>
    %10 = tpu.matmul %3, %2, %cst_9 {dimension_numbers = #tpu.dot_dimension_numbers<[1], [0], [0], [1], [0, 0, 1, 1], [], []>} : vector<1x32xf32>, vector<32x128xf32>, vector<1x128xf32> -> vector<1x128xf32>
    %11 = arith.addf %9, %10 : vector<1x128xf32>
    %12 = math.tanh %11 : vector<1x128xf32>
    %13 = vector.extract_strided_slice %12 {offsets = [0, 0], sizes = [1, 32], strides = [1, 1]} : vector<1x128xf32> to vector<1x32xf32>
    %cst_10 = arith.constant 1.000000e+00 : f32
    %14 = vector.broadcast %cst_10 : f32 to vector<1x32xf32>
    %15 = arith.addf %13, %14 : vector<1x32xf32>
    %cst_11 = arith.constant 5.000000e-01 : f32
    %16 = vector.broadcast %cst_11 : f32 to vector<1x32xf32>
    %17 = arith.mulf %16, %15 : vector<1x32xf32>
    %18 = vector.extract_strided_slice %12 {offsets = [0, 32], sizes = [1, 32], strides = [1, 1]} : vector<1x128xf32> to vector<1x32xf32>
    %cst_12 = arith.constant 1.000000e+00 : f32
    %19 = vector.broadcast %cst_12 : f32 to vector<1x32xf32>
    %20 = arith.addf %18, %19 : vector<1x32xf32>
    %cst_13 = arith.constant 5.000000e-01 : f32
    %21 = vector.broadcast %cst_13 : f32 to vector<1x32xf32>
    %22 = arith.mulf %21, %20 : vector<1x32xf32>
    %23 = vector.extract_strided_slice %12 {offsets = [0, 64], sizes = [1, 32], strides = [1, 1]} : vector<1x128xf32> to vector<1x32xf32>
    %24 = vector.extract_strided_slice %12 {offsets = [0, 96], sizes = [1, 32], strides = [1, 1]} : vector<1x128xf32> to vector<1x32xf32>
    %cst_14 = arith.constant 1.000000e+00 : f32
    %25 = vector.broadcast %cst_14 : f32 to vector<1x32xf32>
    %26 = arith.addf %24, %25 : vector<1x32xf32>
    %cst_15 = arith.constant 5.000000e-01 : f32
    %27 = vector.broadcast %cst_15 : f32 to vector<1x32xf32>
    %28 = arith.mulf %27, %26 : vector<1x32xf32>
    %29 = arith.mulf %22, %4 : vector<1x32xf32>
    %30 = arith.mulf %17, %23 : vector<1x32xf32>
    %31 = arith.addf %29, %30 : vector<1x32xf32>
    %32 = math.tanh %31 : vector<1x32xf32>
    %33 = arith.mulf %28, %32 : vector<1x32xf32>
    %c1 = arith.constant 1 : index
    %c0_16 = arith.constant 0 : index
    %c0_17 = arith.constant 0 : index
    %34 = vector.load %arg1[%c1, %c0_16, %c0_17] : memref<8x1x1xf32, #tpu.memory_space<vmem>>, vector<1x1x1xf32>
    %35 = vector.shape_cast %34 : vector<1x1x1xf32> to vector<1x1xf32>
    %36 = vector.broadcast %35 : vector<1x1xf32> to vector<1x128xf32>
    %37 = arith.mulf %36, %0 : vector<1x128xf32>
    %38 = arith.addf %37, %1 : vector<1x128xf32>
    %cst_18 = arith.constant dense<0.000000e+00> : vector<1x128xf32>
    %39 = tpu.matmul %33, %2, %cst_18 {dimension_numbers = #tpu.dot_dimension_numbers<[1], [0], [0], [1], [0, 0, 1, 1], [], []>} : vector<1x32xf32>, vector<32x128xf32>, vector<1x128xf32> -> vector<1x128xf32>
    %40 = arith.addf %38, %39 : vector<1x128xf32>
    %41 = math.tanh %40 : vector<1x128xf32>
    %42 = vector.extract_strided_slice %41 {offsets = [0, 0], sizes = [1, 32], strides = [1, 1]} : vector<1x128xf32> to vector<1x32xf32>
    %cst_19 = arith.constant 1.000000e+00 : f32
    %43 = vector.broadcast %cst_19 : f32 to vector<1x32xf32>
    %44 = arith.addf %42, %43 : vector<1x32xf32>
    %cst_20 = arith.constant 5.000000e-01 : f32
    %45 = vector.broadcast %cst_20 : f32 to vector<1x32xf32>
    %46 = arith.mulf %45, %44 : vector<1x32xf32>
    %47 = vector.extract_strided_slice %41 {offsets = [0, 32], sizes = [1, 32], strides = [1, 1]} : vector<1x128xf32> to vector<1x32xf32>
    %cst_21 = arith.constant 1.000000e+00 : f32
    %48 = vector.broadcast %cst_21 : f32 to vector<1x32xf32>
    %49 = arith.addf %47, %48 : vector<1x32xf32>
    %cst_22 = arith.constant 5.000000e-01 : f32
    %50 = vector.broadcast %cst_22 : f32 to vector<1x32xf32>
    %51 = arith.mulf %50, %49 : vector<1x32xf32>
    %52 = vector.extract_strided_slice %41 {offsets = [0, 64], sizes = [1, 32], strides = [1, 1]} : vector<1x128xf32> to vector<1x32xf32>
    %53 = vector.extract_strided_slice %41 {offsets = [0, 96], sizes = [1, 32], strides = [1, 1]} : vector<1x128xf32> to vector<1x32xf32>
    %cst_23 = arith.constant 1.000000e+00 : f32
    %54 = vector.broadcast %cst_23 : f32 to vector<1x32xf32>
    %55 = arith.addf %53, %54 : vector<1x32xf32>
    %cst_24 = arith.constant 5.000000e-01 : f32
    %56 = vector.broadcast %cst_24 : f32 to vector<1x32xf32>
    %57 = arith.mulf %56, %55 : vector<1x32xf32>
    %58 = arith.mulf %51, %31 : vector<1x32xf32>
    %59 = arith.mulf %46, %52 : vector<1x32xf32>
    %60 = arith.addf %58, %59 : vector<1x32xf32>
    %61 = math.tanh %60 : vector<1x32xf32>
    %62 = arith.mulf %57, %61 : vector<1x32xf32>
    %c2 = arith.constant 2 : index
    %c0_25 = arith.constant 0 : index
    %c0_26 = arith.constant 0 : index
    %63 = vector.load %arg1[%c2, %c0_25, %c0_26] : memref<8x1x1xf32, #tpu.memory_space<vmem>>, vector<1x1x1xf32>
    %64 = vector.shape_cast %63 : vector<1x1x1xf32> to vector<1x1xf32>
    %65 = vector.broadcast %64 : vector<1x1xf32> to vector<1x128xf32>
    %66 = arith.mulf %65, %0 : vector<1x128xf32>
    %67 = arith.addf %66, %1 : vector<1x128xf32>
    %cst_27 = arith.constant dense<0.000000e+00> : vector<1x128xf32>
    %68 = tpu.matmul %62, %2, %cst_27 {dimension_numbers = #tpu.dot_dimension_numbers<[1], [0], [0], [1], [0, 0, 1, 1], [], []>} : vector<1x32xf32>, vector<32x128xf32>, vector<1x128xf32> -> vector<1x128xf32>
    %69 = arith.addf %67, %68 : vector<1x128xf32>
    %70 = math.tanh %69 : vector<1x128xf32>
    %71 = vector.extract_strided_slice %70 {offsets = [0, 0], sizes = [1, 32], strides = [1, 1]} : vector<1x128xf32> to vector<1x32xf32>
    %cst_28 = arith.constant 1.000000e+00 : f32
    %72 = vector.broadcast %cst_28 : f32 to vector<1x32xf32>
    %73 = arith.addf %71, %72 : vector<1x32xf32>
    %cst_29 = arith.constant 5.000000e-01 : f32
    %74 = vector.broadcast %cst_29 : f32 to vector<1x32xf32>
    %75 = arith.mulf %74, %73 : vector<1x32xf32>
    %76 = vector.extract_strided_slice %70 {offsets = [0, 32], sizes = [1, 32], strides = [1, 1]} : vector<1x128xf32> to vector<1x32xf32>
    %cst_30 = arith.constant 1.000000e+00 : f32
    %77 = vector.broadcast %cst_30 : f32 to vector<1x32xf32>
    %78 = arith.addf %76, %77 : vector<1x32xf32>
    %cst_31 = arith.constant 5.000000e-01 : f32
    %79 = vector.broadcast %cst_31 : f32 to vector<1x32xf32>
    %80 = arith.mulf %79, %78 : vector<1x32xf32>
    %81 = vector.extract_strided_slice %70 {offsets = [0, 64], sizes = [1, 32], strides = [1, 1]} : vector<1x128xf32> to vector<1x32xf32>
    %82 = vector.extract_strided_slice %70 {offsets = [0, 96], sizes = [1, 32], strides = [1, 1]} : vector<1x128xf32> to vector<1x32xf32>
    %cst_32 = arith.constant 1.000000e+00 : f32
    %83 = vector.broadcast %cst_32 : f32 to vector<1x32xf32>
    %84 = arith.addf %82, %83 : vector<1x32xf32>
    %cst_33 = arith.constant 5.000000e-01 : f32
    %85 = vector.broadcast %cst_33 : f32 to vector<1x32xf32>
    %86 = arith.mulf %85, %84 : vector<1x32xf32>
    %87 = arith.mulf %80, %60 : vector<1x32xf32>
    %88 = arith.mulf %75, %81 : vector<1x32xf32>
    %89 = arith.addf %87, %88 : vector<1x32xf32>
    %90 = math.tanh %89 : vector<1x32xf32>
    %91 = arith.mulf %86, %90 : vector<1x32xf32>
    %c3 = arith.constant 3 : index
    %c0_34 = arith.constant 0 : index
    %c0_35 = arith.constant 0 : index
    %92 = vector.load %arg1[%c3, %c0_34, %c0_35] : memref<8x1x1xf32, #tpu.memory_space<vmem>>, vector<1x1x1xf32>
    %93 = vector.shape_cast %92 : vector<1x1x1xf32> to vector<1x1xf32>
    %94 = vector.broadcast %93 : vector<1x1xf32> to vector<1x128xf32>
    %95 = arith.mulf %94, %0 : vector<1x128xf32>
    %96 = arith.addf %95, %1 : vector<1x128xf32>
    %cst_36 = arith.constant dense<0.000000e+00> : vector<1x128xf32>
    %97 = tpu.matmul %91, %2, %cst_36 {dimension_numbers = #tpu.dot_dimension_numbers<[1], [0], [0], [1], [0, 0, 1, 1], [], []>} : vector<1x32xf32>, vector<32x128xf32>, vector<1x128xf32> -> vector<1x128xf32>
    %98 = arith.addf %96, %97 : vector<1x128xf32>
    %99 = math.tanh %98 : vector<1x128xf32>
    %100 = vector.extract_strided_slice %99 {offsets = [0, 0], sizes = [1, 32], strides = [1, 1]} : vector<1x128xf32> to vector<1x32xf32>
    %cst_37 = arith.constant 1.000000e+00 : f32
    %101 = vector.broadcast %cst_37 : f32 to vector<1x32xf32>
    %102 = arith.addf %100, %101 : vector<1x32xf32>
    %cst_38 = arith.constant 5.000000e-01 : f32
    %103 = vector.broadcast %cst_38 : f32 to vector<1x32xf32>
    %104 = arith.mulf %103, %102 : vector<1x32xf32>
    %105 = vector.extract_strided_slice %99 {offsets = [0, 32], sizes = [1, 32], strides = [1, 1]} : vector<1x128xf32> to vector<1x32xf32>
    %cst_39 = arith.constant 1.000000e+00 : f32
    %106 = vector.broadcast %cst_39 : f32 to vector<1x32xf32>
    %107 = arith.addf %105, %106 : vector<1x32xf32>
    %cst_40 = arith.constant 5.000000e-01 : f32
    %108 = vector.broadcast %cst_40 : f32 to vector<1x32xf32>
    %109 = arith.mulf %108, %107 : vector<1x32xf32>
    %110 = vector.extract_strided_slice %99 {offsets = [0, 64], sizes = [1, 32], strides = [1, 1]} : vector<1x128xf32> to vector<1x32xf32>
    %111 = vector.extract_strided_slice %99 {offsets = [0, 96], sizes = [1, 32], strides = [1, 1]} : vector<1x128xf32> to vector<1x32xf32>
    %cst_41 = arith.constant 1.000000e+00 : f32
    %112 = vector.broadcast %cst_41 : f32 to vector<1x32xf32>
    %113 = arith.addf %111, %112 : vector<1x32xf32>
    %cst_42 = arith.constant 5.000000e-01 : f32
    %114 = vector.broadcast %cst_42 : f32 to vector<1x32xf32>
    %115 = arith.mulf %114, %113 : vector<1x32xf32>
    %116 = arith.mulf %109, %89 : vector<1x32xf32>
    %117 = arith.mulf %104, %110 : vector<1x32xf32>
    %118 = arith.addf %116, %117 : vector<1x32xf32>
    %119 = math.tanh %118 : vector<1x32xf32>
    %120 = arith.mulf %115, %119 : vector<1x32xf32>
    %c4 = arith.constant 4 : index
    %c0_43 = arith.constant 0 : index
    %c0_44 = arith.constant 0 : index
    %121 = vector.load %arg1[%c4, %c0_43, %c0_44] : memref<8x1x1xf32, #tpu.memory_space<vmem>>, vector<1x1x1xf32>
    %122 = vector.shape_cast %121 : vector<1x1x1xf32> to vector<1x1xf32>
    %123 = vector.broadcast %122 : vector<1x1xf32> to vector<1x128xf32>
    %124 = arith.mulf %123, %0 : vector<1x128xf32>
    %125 = arith.addf %124, %1 : vector<1x128xf32>
    %cst_45 = arith.constant dense<0.000000e+00> : vector<1x128xf32>
    %126 = tpu.matmul %120, %2, %cst_45 {dimension_numbers = #tpu.dot_dimension_numbers<[1], [0], [0], [1], [0, 0, 1, 1], [], []>} : vector<1x32xf32>, vector<32x128xf32>, vector<1x128xf32> -> vector<1x128xf32>
    %127 = arith.addf %125, %126 : vector<1x128xf32>
    %128 = math.tanh %127 : vector<1x128xf32>
    %129 = vector.extract_strided_slice %128 {offsets = [0, 0], sizes = [1, 32], strides = [1, 1]} : vector<1x128xf32> to vector<1x32xf32>
    %cst_46 = arith.constant 1.000000e+00 : f32
    %130 = vector.broadcast %cst_46 : f32 to vector<1x32xf32>
    %131 = arith.addf %129, %130 : vector<1x32xf32>
    %cst_47 = arith.constant 5.000000e-01 : f32
    %132 = vector.broadcast %cst_47 : f32 to vector<1x32xf32>
    %133 = arith.mulf %132, %131 : vector<1x32xf32>
    %134 = vector.extract_strided_slice %128 {offsets = [0, 32], sizes = [1, 32], strides = [1, 1]} : vector<1x128xf32> to vector<1x32xf32>
    %cst_48 = arith.constant 1.000000e+00 : f32
    %135 = vector.broadcast %cst_48 : f32 to vector<1x32xf32>
    %136 = arith.addf %134, %135 : vector<1x32xf32>
    %cst_49 = arith.constant 5.000000e-01 : f32
    %137 = vector.broadcast %cst_49 : f32 to vector<1x32xf32>
    %138 = arith.mulf %137, %136 : vector<1x32xf32>
    %139 = vector.extract_strided_slice %128 {offsets = [0, 64], sizes = [1, 32], strides = [1, 1]} : vector<1x128xf32> to vector<1x32xf32>
    %140 = vector.extract_strided_slice %128 {offsets = [0, 96], sizes = [1, 32], strides = [1, 1]} : vector<1x128xf32> to vector<1x32xf32>
    %cst_50 = arith.constant 1.000000e+00 : f32
    %141 = vector.broadcast %cst_50 : f32 to vector<1x32xf32>
    %142 = arith.addf %140, %141 : vector<1x32xf32>
    %cst_51 = arith.constant 5.000000e-01 : f32
    %143 = vector.broadcast %cst_51 : f32 to vector<1x32xf32>
    %144 = arith.mulf %143, %142 : vector<1x32xf32>
    %145 = arith.mulf %138, %118 : vector<1x32xf32>
    %146 = arith.mulf %133, %139 : vector<1x32xf32>
    %147 = arith.addf %145, %146 : vector<1x32xf32>
    %148 = math.tanh %147 : vector<1x32xf32>
    %149 = arith.mulf %144, %148 : vector<1x32xf32>
    %c5 = arith.constant 5 : index
    %c0_52 = arith.constant 0 : index
    %c0_53 = arith.constant 0 : index
    %150 = vector.load %arg1[%c5, %c0_52, %c0_53] : memref<8x1x1xf32, #tpu.memory_space<vmem>>, vector<1x1x1xf32>
    %151 = vector.shape_cast %150 : vector<1x1x1xf32> to vector<1x1xf32>
    %152 = vector.broadcast %151 : vector<1x1xf32> to vector<1x128xf32>
    %153 = arith.mulf %152, %0 : vector<1x128xf32>
    %154 = arith.addf %153, %1 : vector<1x128xf32>
    %cst_54 = arith.constant dense<0.000000e+00> : vector<1x128xf32>
    %155 = tpu.matmul %149, %2, %cst_54 {dimension_numbers = #tpu.dot_dimension_numbers<[1], [0], [0], [1], [0, 0, 1, 1], [], []>} : vector<1x32xf32>, vector<32x128xf32>, vector<1x128xf32> -> vector<1x128xf32>
    %156 = arith.addf %154, %155 : vector<1x128xf32>
    %157 = math.tanh %156 : vector<1x128xf32>
    %158 = vector.extract_strided_slice %157 {offsets = [0, 0], sizes = [1, 32], strides = [1, 1]} : vector<1x128xf32> to vector<1x32xf32>
    %cst_55 = arith.constant 1.000000e+00 : f32
    %159 = vector.broadcast %cst_55 : f32 to vector<1x32xf32>
    %160 = arith.addf %158, %159 : vector<1x32xf32>
    %cst_56 = arith.constant 5.000000e-01 : f32
    %161 = vector.broadcast %cst_56 : f32 to vector<1x32xf32>
    %162 = arith.mulf %161, %160 : vector<1x32xf32>
    %163 = vector.extract_strided_slice %157 {offsets = [0, 32], sizes = [1, 32], strides = [1, 1]} : vector<1x128xf32> to vector<1x32xf32>
    %cst_57 = arith.constant 1.000000e+00 : f32
    %164 = vector.broadcast %cst_57 : f32 to vector<1x32xf32>
    %165 = arith.addf %163, %164 : vector<1x32xf32>
    %cst_58 = arith.constant 5.000000e-01 : f32
    %166 = vector.broadcast %cst_58 : f32 to vector<1x32xf32>
    %167 = arith.mulf %166, %165 : vector<1x32xf32>
    %168 = vector.extract_strided_slice %157 {offsets = [0, 64], sizes = [1, 32], strides = [1, 1]} : vector<1x128xf32> to vector<1x32xf32>
    %169 = vector.extract_strided_slice %157 {offsets = [0, 96], sizes = [1, 32], strides = [1, 1]} : vector<1x128xf32> to vector<1x32xf32>
    %cst_59 = arith.constant 1.000000e+00 : f32
    %170 = vector.broadcast %cst_59 : f32 to vector<1x32xf32>
    %171 = arith.addf %169, %170 : vector<1x32xf32>
    %cst_60 = arith.constant 5.000000e-01 : f32
    %172 = vector.broadcast %cst_60 : f32 to vector<1x32xf32>
    %173 = arith.mulf %172, %171 : vector<1x32xf32>
    %174 = arith.mulf %167, %147 : vector<1x32xf32>
    %175 = arith.mulf %162, %168 : vector<1x32xf32>
    %176 = arith.addf %174, %175 : vector<1x32xf32>
    %177 = math.tanh %176 : vector<1x32xf32>
    %178 = arith.mulf %173, %177 : vector<1x32xf32>
    %c6 = arith.constant 6 : index
    %c0_61 = arith.constant 0 : index
    %c0_62 = arith.constant 0 : index
    %179 = vector.load %arg1[%c6, %c0_61, %c0_62] : memref<8x1x1xf32, #tpu.memory_space<vmem>>, vector<1x1x1xf32>
    %180 = vector.shape_cast %179 : vector<1x1x1xf32> to vector<1x1xf32>
    %181 = vector.broadcast %180 : vector<1x1xf32> to vector<1x128xf32>
    %182 = arith.mulf %181, %0 : vector<1x128xf32>
    %183 = arith.addf %182, %1 : vector<1x128xf32>
    %cst_63 = arith.constant dense<0.000000e+00> : vector<1x128xf32>
    %184 = tpu.matmul %178, %2, %cst_63 {dimension_numbers = #tpu.dot_dimension_numbers<[1], [0], [0], [1], [0, 0, 1, 1], [], []>} : vector<1x32xf32>, vector<32x128xf32>, vector<1x128xf32> -> vector<1x128xf32>
    %185 = arith.addf %183, %184 : vector<1x128xf32>
    %186 = math.tanh %185 : vector<1x128xf32>
    %187 = vector.extract_strided_slice %186 {offsets = [0, 0], sizes = [1, 32], strides = [1, 1]} : vector<1x128xf32> to vector<1x32xf32>
    %cst_64 = arith.constant 1.000000e+00 : f32
    %188 = vector.broadcast %cst_64 : f32 to vector<1x32xf32>
    %189 = arith.addf %187, %188 : vector<1x32xf32>
    %cst_65 = arith.constant 5.000000e-01 : f32
    %190 = vector.broadcast %cst_65 : f32 to vector<1x32xf32>
    %191 = arith.mulf %190, %189 : vector<1x32xf32>
    %192 = vector.extract_strided_slice %186 {offsets = [0, 32], sizes = [1, 32], strides = [1, 1]} : vector<1x128xf32> to vector<1x32xf32>
    %cst_66 = arith.constant 1.000000e+00 : f32
    %193 = vector.broadcast %cst_66 : f32 to vector<1x32xf32>
    %194 = arith.addf %192, %193 : vector<1x32xf32>
    %cst_67 = arith.constant 5.000000e-01 : f32
    %195 = vector.broadcast %cst_67 : f32 to vector<1x32xf32>
    %196 = arith.mulf %195, %194 : vector<1x32xf32>
    %197 = vector.extract_strided_slice %186 {offsets = [0, 64], sizes = [1, 32], strides = [1, 1]} : vector<1x128xf32> to vector<1x32xf32>
    %198 = vector.extract_strided_slice %186 {offsets = [0, 96], sizes = [1, 32], strides = [1, 1]} : vector<1x128xf32> to vector<1x32xf32>
    %cst_68 = arith.constant 1.000000e+00 : f32
    %199 = vector.broadcast %cst_68 : f32 to vector<1x32xf32>
    %200 = arith.addf %198, %199 : vector<1x32xf32>
    %cst_69 = arith.constant 5.000000e-01 : f32
    %201 = vector.broadcast %cst_69 : f32 to vector<1x32xf32>
    %202 = arith.mulf %201, %200 : vector<1x32xf32>
    %203 = arith.mulf %196, %176 : vector<1x32xf32>
    %204 = arith.mulf %191, %197 : vector<1x32xf32>
    %205 = arith.addf %203, %204 : vector<1x32xf32>
    %206 = math.tanh %205 : vector<1x32xf32>
    %207 = arith.mulf %202, %206 : vector<1x32xf32>
    %c7 = arith.constant 7 : index
    %c0_70 = arith.constant 0 : index
    %c0_71 = arith.constant 0 : index
    %208 = vector.load %arg1[%c7, %c0_70, %c0_71] : memref<8x1x1xf32, #tpu.memory_space<vmem>>, vector<1x1x1xf32>
    %209 = vector.shape_cast %208 : vector<1x1x1xf32> to vector<1x1xf32>
    %210 = vector.broadcast %209 : vector<1x1xf32> to vector<1x128xf32>
    %211 = arith.mulf %210, %0 : vector<1x128xf32>
    %212 = arith.addf %211, %1 : vector<1x128xf32>
    %cst_72 = arith.constant dense<0.000000e+00> : vector<1x128xf32>
    %213 = tpu.matmul %207, %2, %cst_72 {dimension_numbers = #tpu.dot_dimension_numbers<[1], [0], [0], [1], [0, 0, 1, 1], [], []>} : vector<1x32xf32>, vector<32x128xf32>, vector<1x128xf32> -> vector<1x128xf32>
    %214 = arith.addf %212, %213 : vector<1x128xf32>
    %215 = math.tanh %214 : vector<1x128xf32>
    %216 = vector.extract_strided_slice %215 {offsets = [0, 0], sizes = [1, 32], strides = [1, 1]} : vector<1x128xf32> to vector<1x32xf32>
    %cst_73 = arith.constant 1.000000e+00 : f32
    %217 = vector.broadcast %cst_73 : f32 to vector<1x32xf32>
    %218 = arith.addf %216, %217 : vector<1x32xf32>
    %cst_74 = arith.constant 5.000000e-01 : f32
    %219 = vector.broadcast %cst_74 : f32 to vector<1x32xf32>
    %220 = arith.mulf %219, %218 : vector<1x32xf32>
    %221 = vector.extract_strided_slice %215 {offsets = [0, 32], sizes = [1, 32], strides = [1, 1]} : vector<1x128xf32> to vector<1x32xf32>
    %cst_75 = arith.constant 1.000000e+00 : f32
    %222 = vector.broadcast %cst_75 : f32 to vector<1x32xf32>
    %223 = arith.addf %221, %222 : vector<1x32xf32>
    %cst_76 = arith.constant 5.000000e-01 : f32
    %224 = vector.broadcast %cst_76 : f32 to vector<1x32xf32>
    %225 = arith.mulf %224, %223 : vector<1x32xf32>
    %226 = vector.extract_strided_slice %215 {offsets = [0, 64], sizes = [1, 32], strides = [1, 1]} : vector<1x128xf32> to vector<1x32xf32>
    %227 = vector.extract_strided_slice %215 {offsets = [0, 96], sizes = [1, 32], strides = [1, 1]} : vector<1x128xf32> to vector<1x32xf32>
    %cst_77 = arith.constant 1.000000e+00 : f32
    %228 = vector.broadcast %cst_77 : f32 to vector<1x32xf32>
    %229 = arith.addf %227, %228 : vector<1x32xf32>
    %cst_78 = arith.constant 5.000000e-01 : f32
    %230 = vector.broadcast %cst_78 : f32 to vector<1x32xf32>
    %231 = arith.mulf %230, %229 : vector<1x32xf32>
    %232 = arith.mulf %225, %205 : vector<1x32xf32>
    %233 = arith.mulf %220, %226 : vector<1x32xf32>
    %234 = arith.addf %232, %233 : vector<1x32xf32>
    %235 = math.tanh %234 : vector<1x32xf32>
    %236 = arith.mulf %231, %235 : vector<1x32xf32>
    %c0_79 = arith.constant 0 : index
    %c0_80 = arith.constant 0 : index
    %237 = vector.load %arg5[%c0_79, %c0_80] : memref<1x32xf32, #tpu.memory_space<vmem>>, vector<1x32xf32>
    tpu.vector_store %arg5[%c0_79, %c0_80], %236 {strides = array<i32>} : memref<1x32xf32, #tpu.memory_space<vmem>>, vector<1x32xf32>,
    return
  }
  func.func @transform_0(%arg0: i32) -> (i32, i32, i32) {
    %c0_i32 = arith.constant 0 : i32
    %c0_i32_0 = arith.constant 0 : i32
    %c0_i32_1 = arith.constant 0 : i32
    return %c0_i32, %arg0, %c0_i32_0 : i32, i32, i32
  }
  func.func @transform_1(%arg0: i32) -> (i32, i32) {
    %c0_i32 = arith.constant 0 : i32
    %c0_i32_0 = arith.constant 0 : i32
    %c0_i32_1 = arith.constant 0 : i32
    return %c0_i32, %c0_i32_0 : i32, i32
  }
  func.func @transform_2(%arg0: i32) -> (i32, i32) {
    %c0_i32 = arith.constant 0 : i32
    %c0_i32_0 = arith.constant 0 : i32
    %c0_i32_1 = arith.constant 0 : i32
    return %c0_i32, %c0_i32_0 : i32, i32
  }
  func.func @transform_3(%arg0: i32) -> (i32, i32) {
    %c0_i32 = arith.constant 0 : i32
    %c0_i32_0 = arith.constant 0 : i32
    %c0_i32_1 = arith.constant 0 : i32
    return %c0_i32, %c0_i32_0 : i32, i32
  }
  func.func @transform_4(%arg0: i32) -> (i32, i32) {
    %c0_i32 = arith.constant 0 : i32
    %c0_i32_0 = arith.constant 0 : i32
    return %arg0, %c0_i32 : i32, i32
  }
}

</mosaic_0001>

<bundles_post_ra>
// kernel: lstm_forward_pallas.1
= control target key start
LH: loop header
LB: loop body
LE: loop exit
PB: predicated region body
PF: predicated region fallthrough
CT: control target
= control target key end

     0   :  { %9 = vsyncpa [#allocation3], 0  ;;  %s1207_s15 = smov [#allocation2]   ;;  %s1416_s0 = inlined_call_operand.vmem [shape: f32[8,1,1], index: 0, kind: input, shape index: {}]   ;;  %s1417_s1 = inlined_call_operand.vmem [shape: f32[1,128], index: 1, kind: input, shape index: {}]   ;;  %s1418_s2 = inlined_call_operand.hbm [shape: f32[32,128], index: 2, kind: input, shape index: {}]   ;;  %s1419_s3 = inlined_call_operand.vmem [shape: f32[1,128], index: 3, kind: input, shape index: {}]   ;;  %s1420_s4 = inlined_call_operand.vmem [shape: f32[1,32], index: 4, kind: output, shape index: {}]  }
   0x1   :  { %s19_s16 = sshll.u32 %s1207_s15, 4  ;;  %s1183_s19 = scalar_lea.hbm %s1418_s2, 512  ;;  %s20_s16 = int_to_ptr.vmem [resolvable:$true] %s19_s16 }
   0x2   :  { %p1184_p0 = scmp.ne.s32.totalorder %s1418_s2, %s1183_s19  ;;  %p1187_p1 = scmp.lt.u32.totalorder %s1183_s19, %s1418_s2 }
   0x4   :  { %p1189_p2 = pnand %p1187_p1, %p1184_p0 }
   0x6   :  { %1192 = shalt.err (!%p1189_p2)
}
   0x7   :  { %s1193_s24 = scalar_lea.vmem %s20_s16, 512  ;;  %p1198_p4 = scmp.lt.s32.totalorder %s20_s16, %s20_s16 }
   0x8   :  { %p1194_p3 = scmp.ne.s32.totalorder %s20_s16, %s1193_s24  ;;  %p1199_p5 = scmp.lt.s32.totalorder %s1193_s24, %s1193_s24 }
   0xa   :  { %p1200_p6 = por %p1199_p5, %p1198_p4 }
   0xc   :  { %p1201_p7 = pnand %p1200_p6, %p1194_p3 }
   0xe   :  { %1204 = shalt.err (!%p1201_p7)
}
   0xf   :  { %s1208_s25 = smov 128   ;;  %s1209_s26 = smov 8  }
  0x10   :  { %25 = dma.hbm_to_vmem [thread:$0]  %s1418_s2, 512, %s20_s16, [#allocation3], %s1208_s25, %s1208_s25, %s1209_s26  }
  0x11   :  { %1205 = dma.done.wait [#allocation3], 512  }
  0x12   :  { %1206 = vsyncadd [#allocation3], 4294966784  ;;  %v1210_v0 = vmov 0.0|0.0   ;;  %vm1211_vm0 = vmmov 0   ;;  %v1212_v1 = vmov 0.0   ;;  %v1213_v2 = vmov 0  }
  0x13   :  { %1092 = vmatprep.subr.bf16.mxu0 %v1210_v0  ;;  %1012 = vmatprep.mubr.msk.f32.mxu0 %vm1211_vm0, %v1212_v1  ;;  %v33_v3 = vld [vmem:[#allocation2] sm:$0xff]  ;;  %v34_v4 = vld [vmem:[#allocation2 + $0x8] sm:$0xff]  ;;  %v35_v5 = vld [vmem:[#allocation2 + $0x10] sm:$0xff]  ;;  %v43_v10 = vlaneseq  ;;  %s1214_s8 = smov 64   ;;  %vm49_vm1 = vcmask 261120   ;;  %vm943_vm2 = vcmask 253952  }
  0x14   :  { %1149 = vset.pattern.permute.xlu0 %v1213_v2  ;;  %1098 = vmatprep.subr.bf16.mxu1 %v1210_v0  ;;  %v1259_v6 = vpack.c.bf16 %v34_v4, %v33_v3  ;;  %v36_v7 = vld [vmem:[#allocation2 + $0x18] sm:$0xff]  ;;  %v37_v8 = vld [vmem:[%s1416_s0] sm:$0x1]  ;;  %v950_v31 = vld [vmem:[%s1416_s0 + $0x1] sm:$0x1] }
  0x15   :  { %1023 = vmatprep.mubr.msk.f32.mxu1 %vm1211_vm0, %v1212_v1  ;;  %1150 = vset.pattern.permute.xlu1 %v1213_v2  ;;  %v1265_v9 = vpack.c.bf16 %v36_v7, %v35_v5  ;;  %v44_v11 = vshrl.u32 %v43_v10, 7  ;;  %v1287_v15 = vld [vmem:[%s1417_s1] sm:$0x1]  ;;  %s1215_s1 = smov 32   ;;  %v952_v52 = vld [vmem:[%s1416_s0 + $0x2] sm:$0x1] }
  0x16   :  { %40 = vperm.xlu0 %1149, %v37_v8   ;;  %1094 = vmatpush3.bf16.msra.mxu0 %v1259_v6  ;;  %v1293_v17 = vld [vmem:[%s1419_s3] sm:$0x1] }
  0x17   :  { %1100 = vmatpush3.bf16.msra.mxu1 %v1259_v6  ;;  %1095 = vmatprep.subr.bf16.mxu0 %v1210_v0  ;;  %v1281_v12 = vsub.s32 0, %v44_v11 }
  0x18   :  { %1101 = vmatprep.subr.bf16.mxu1 %v1210_v0 }
  0x1a   :  { %1097 = vmatpush3.bf16.msra.mxu0 %v1265_v9 }
  0x1b   :  { %1103 = vmatpush3.bf16.msra.mxu1 %v1265_v9  ;;  %1104 = vmatprep.subr.bf16.mxu0 %v1210_v0 }
  0x1c   :  { %1110 = vmatprep.subr.bf16.mxu1 %v1210_v0 }
  0x1d   :  { %1013 = vmatmul.mubr.f32.vlgmr.msra.gmra.mrb[0].mxu0 %v1212_v1 }
  0x1e   :  { %1106 = vmatpush3.bf16.msra.mxu0 %v1259_v6  ;;  %1034 = vmatprep.mubr.msk.f32.mxu0 %vm1211_vm0, %v1212_v1 }
  0x1f   :  { %1107 = vmatprep.subr.bf16.mxu0 %v1210_v0 }
  0x22   :  { %1109 = vmatpush3.bf16.msra.mxu0 %v1265_v9 }
  0x23   :  { %1116 = vmatprep.subr.bf16.mxu0 %v1210_v0 }
  0x95   :  { %v41_v13 = vpop.permute.xlu0 %40 }
  0x96   :  { %v46_v14 = vrot.slane %v41_v13, %v1281_v12 }
  0x98   :  { %v47_v16 = vmul.f32 %v46_v14, %v1287_v15  ;;  %v954_v14 = vld [vmem:[%s1416_s0 + $0x3] sm:$0x1] }
  0x9a   :  { %v48_v18 = vadd.f32 %v47_v16, %v1293_v17 }
  0xf0   :  { %v119_v19 = vpop.f32.mrb[0].mxu0 }
  0xf1   :  { %v123_v20 = vadd.f32 %v119_v19, %v48_v18  ;;  %v1014_v21 = vpop.f32.mrb[1].mxu0 }
  0xf3   :  { %1151 = vtanh.f32 %v123_v20 }
  0xfd   :  { %v1152_v22 = vpop.eup %1151 }
  0xfe   :  { %129 = vrot.lane.b32.xlu0 %v1152_v22, %s1214_s8  ;;  %v125_v23 = vadd.f32 1.0, %v1152_v22 }
 0x100   :  { %v126_v24 = vmul.f32 0.5, %v125_v23 }
 0x102   :  { %v127_v27 = vmul.f32 0.0, %v126_v24 }
 0x170   :  { %v130_v25 = vpop.permute.xlu0 %129 }
 0x171   :  { %v132_v26 = vmul.f32 %v130_v25, %v126_v24 }
 0x173   :  { %134 = vrot.lane.b32.xlu1 %v132_v26, %s1215_s1 }
 0x1e5   :  { %v135_v28 = vpop.permute.xlu1 %134 }
 0x1e6   :  { %v137_v29 = vadd.f32 %v135_v28, %v127_v27 }
 0x1e8   :  { %1153 = vtanh.f32 %v137_v29 }
 0x1f2   :  { %v1154_v30 = vpop.eup %1153 }
 0x1f3   :  { %140 = vrot.lane.b32.xlu1 %v1154_v30, %s1214_s8 }
 0x1f7   :  { %148 = vperm.xlu1 %1150, %v950_v31  }
 0x265   :  { %v141_v32 = vpop.permute.xlu1 %140 }
 0x266   :  { %v143_v33 = vmul.f32 %v141_v32, %v126_v24 }
 0x268   :  { %v161_v34 = vrot.slane %v143_v33, %v1281_v12 }
 0x26a   :  { %162 = vrot.lane.b32.xlu0 %v161_v34, %s1215_s1 }
 0x276   :  { %v149_v36 = vpop.permute.xlu1 %148 }
 0x277   :  { %v154_v37 = vrot.slane %v149_v36, %v1281_v12 }
 0x279   :  { %v155_v38 = vmul.f32 %v154_v37, %v1287_v15  ;;  %v956_v37 = vld [vmem:[%s1416_s0 + $0x4] sm:$0x1] }
 0x27b   :  { %v156_v39 = vadd.f32 %v155_v38, %v1293_v17 }
 0x2dc   :  { %v163_v35 = vpop.permute.xlu0 %162 }
 0x2dd   :  { %1024 = vmatmul.mubr.msk.f32.vlgmr.msra.gmra.mrb[0].mxu1 %vm49_vm1, %v163_v35 }
 0x2de   :  { %1112 = vmatpush3.bf16.msra.mxu1 %v1259_v6  ;;  %1045 = vmatprep.mubr.msk.f32.mxu1 %vm1211_vm0, %v1212_v1 }
 0x2df   :  { %1113 = vmatprep.subr.bf16.mxu1 %v1210_v0 }
 0x2e2   :  { %1115 = vmatpush3.bf16.msra.mxu1 %v1265_v9 }
 0x2e3   :  { %1122 = vmatprep.subr.bf16.mxu1 %v1210_v0 }
 0x3b0   :  { %v232_v40 = vpop.f32.mrb[0].mxu1 }
 0x3b1   :  { %v236_v41 = vadd.f32 %v232_v40, %v156_v39  ;;  %v1025_v42 = vpop.f32.mrb[1].mxu1 }
 0x3b3   :  { %1155 = vtanh.f32 %v236_v41 }
 0x3bd   :  { %v1156_v43 = vpop.eup %1155 }
 0x3be   :  { %242 = vrot.lane.b32.xlu0 %v1156_v43, %s1214_s8  ;;  %v238_v44 = vadd.f32 1.0, %v1156_v43 }
 0x3c0   :  { %v239_v45 = vmul.f32 0.5, %v238_v44 }
 0x3c2   :  { %v240_v48 = vmul.f32 %v239_v45, %v137_v29 }
 0x430   :  { %v243_v46 = vpop.permute.xlu0 %242 }
 0x431   :  { %v245_v47 = vmul.f32 %v243_v46, %v239_v45 }
 0x433   :  { %247 = vrot.lane.b32.xlu1 %v245_v47, %s1215_s1 }
 0x4a5   :  { %v248_v49 = vpop.permute.xlu1 %247 }
 0x4a6   :  { %v250_v50 = vadd.f32 %v248_v49, %v240_v48 }
 0x4a8   :  { %1157 = vtanh.f32 %v250_v50 }
 0x4b2   :  { %v1158_v51 = vpop.eup %1157 }
 0x4b3   :  { %253 = vrot.lane.b32.xlu0 %v1158_v51, %s1214_s8 }
 0x4b7   :  { %261 = vperm.xlu0 %1149, %v952_v52  }
 0x525   :  { %v254_v53 = vpop.permute.xlu0 %253 }
 0x526   :  { %v256_v54 = vmul.f32 %v254_v53, %v239_v45 }
 0x528   :  { %v274_v55 = vrot.slane %v256_v54, %v1281_v12 }
 0x52a   :  { %275 = vrot.lane.b32.xlu1 %v274_v55, %s1215_s1 }
 0x536   :  { %v262_v57 = vpop.permute.xlu0 %261 }
 0x537   :  { %v267_v58 = vrot.slane %v262_v57, %v1281_v12 }
 0x539   :  { %v268_v59 = vmul.f32 %v267_v58, %v1287_v15  ;;  %v958_v58 = vld [vmem:[%s1416_s0 + $0x5] sm:$0x1] }
 0x53b   :  { %v269_v60 = vadd.f32 %v268_v59, %v1293_v17 }
 0x59c   :  { %v276_v56 = vpop.permute.xlu1 %275 }
 0x59d   :  { %1035 = vmatmul.mubr.msk.f32.vlgmr.msra.gmra.mrb[2].mxu0 %vm49_vm1, %v276_v56 }
 0x59e   :  { %1118 = vmatpush3.bf16.msra.mxu0 %v1259_v6  ;;  %1056 = vmatprep.mubr.msk.f32.mxu0 %vm1211_vm0, %v1212_v1 }
 0x59f   :  { %1119 = vmatprep.subr.bf16.mxu0 %v1210_v0 }
 0x5a2   :  { %1121 = vmatpush3.bf16.msra.mxu0 %v1265_v9 }
 0x5a3   :  { %1128 = vmatprep.subr.bf16.mxu0 %v1210_v0 }
 0x670   :  { %v345_v61 = vpop.f32.mrb[2].mxu0 }
 0x671   :  { %v349_v62 = vadd.f32 %v345_v61, %v269_v60  ;;  %v1036_v63 = vpop.f32.mrb[3].mxu0 }
 0x673   :  { %1159 = vtanh.f32 %v349_v62 }
 0x67d   :  { %v1160_v2 = vpop.eup %1159 }
 0x67e   :  { %355 = vrot.lane.b32.xlu1 %v1160_v2, %s1214_s8  ;;  %v351_v3 = vadd.f32 1.0, %v1160_v2 }
 0x680   :  { %v352_v4 = vmul.f32 0.5, %v351_v3 }
 0x682   :  { %v353_v8 = vmul.f32 %v352_v4, %v250_v50 }
 0x6f0   :  { %v356_v5 = vpop.permute.xlu1 %355 }
 0x6f1   :  { %v358_v7 = vmul.f32 %v356_v5, %v352_v4 }
 0x6f3   :  { %360 = vrot.lane.b32.xlu0 %v358_v7, %s1215_s1 }
 0x765   :  { %v361_v10 = vpop.permute.xlu0 %360 }
 0x766   :  { %v363_v11 = vadd.f32 %v361_v10, %v353_v8 }
 0x768   :  { %1161 = vtanh.f32 %v363_v11 }
 0x772   :  { %v1162_v13 = vpop.eup %1161 }
 0x773   :  { %366 = vrot.lane.b32.xlu1 %v1162_v13, %s1214_s8 }
 0x777   :  { %374 = vperm.xlu1 %1150, %v954_v14  }
 0x7e5   :  { %v367_v16 = vpop.permute.xlu1 %366 }
 0x7e6   :  { %v369_v18 = vmul.f32 %v367_v16, %v352_v4 }
 0x7e8   :  { %v387_v19 = vrot.slane %v369_v18, %v1281_v12  ;;  %v960_v18 = vld [vmem:[%s1416_s0 + $0x6] sm:$0x1] }
 0x7ea   :  { %388 = vrot.lane.b32.xlu0 %v387_v19, %s1215_s1 }
 0x7f6   :  { %v375_v21 = vpop.permute.xlu1 %374 }
 0x7f7   :  { %v380_v22 = vrot.slane %v375_v21, %v1281_v12 }
 0x7f9   :  { %v381_v23 = vmul.f32 %v380_v22, %v1287_v15 }
 0x7fb   :  { %v382_v24 = vadd.f32 %v381_v23, %v1293_v17 }
 0x85c   :  { %v389_v20 = vpop.permute.xlu0 %388 }
 0x85d   :  { %1046 = vmatmul.mubr.msk.f32.vlgmr.msra.gmra.mrb[2].mxu1 %vm49_vm1, %v389_v20 }
 0x85e   :  { %1124 = vmatpush3.bf16.msra.mxu1 %v1259_v6  ;;  %1067 = vmatprep.mubr.msk.f32.mxu1 %vm1211_vm0, %v1212_v1 }
 0x85f   :  { %1125 = vmatprep.subr.bf16.mxu1 %v1210_v0 }
 0x862   :  { %1127 = vmatpush3.bf16.msra.mxu1 %v1265_v9 }
 0x863   :  { %1134 = vmatprep.subr.bf16.mxu1 %v1210_v0 }
 0x930   :  { %v458_v25 = vpop.f32.mrb[2].mxu1 }
 0x931   :  { %v462_v26 = vadd.f32 %v458_v25, %v382_v24  ;;  %v1047_v27 = vpop.f32.mrb[3].mxu1 }
 0x933   :  { %1163 = vtanh.f32 %v462_v26 }
 0x93d   :  { %v1164_v28 = vpop.eup %1163 }
 0x93e   :  { %468 = vrot.lane.b32.xlu0 %v1164_v28, %s1214_s8  ;;  %v464_v29 = vadd.f32 1.0, %v1164_v28 }
 0x940   :  { %v465_v30 = vmul.f32 0.5, %v464_v29 }
 0x942   :  { %v466_v33 = vmul.f32 %v465_v30, %v363_v11 }
 0x9b0   :  { %v469_v31 = vpop.permute.xlu0 %468 }
 0x9b1   :  { %v471_v32 = vmul.f32 %v469_v31, %v465_v30 }
 0x9b3   :  { %473 = vrot.lane.b32.xlu1 %v471_v32, %s1215_s1 }
 0xa25   :  { %v474_v34 = vpop.permute.xlu1 %473 }
 0xa26   :  { %v476_v35 = vadd.f32 %v474_v34, %v466_v33 }
 0xa28   :  { %1165 = vtanh.f32 %v476_v35 }
 0xa32   :  { %v1166_v36 = vpop.eup %1165 }
 0xa33   :  { %479 = vrot.lane.b32.xlu0 %v1166_v36, %s1214_s8 }
 0xa37   :  { %487 = vperm.xlu0 %1149, %v956_v37  }
 0xaa5   :  { %v480_v38 = vpop.permute.xlu0 %479 }
 0xaa6   :  { %v482_v39 = vmul.f32 %v480_v38, %v465_v30 }
 0xaa8   :  { %v500_v40 = vrot.slane %v482_v39, %v1281_v12  ;;  %v962_v39 = vld [vmem:[%s1416_s0 + $0x7] sm:$0x1] }
 0xaaa   :  { %501 = vrot.lane.b32.xlu1 %v500_v40, %s1215_s1 }
 0xab6   :  { %v488_v42 = vpop.permute.xlu0 %487 }
 0xab7   :  { %v493_v43 = vrot.slane %v488_v42, %v1281_v12 }
 0xab9   :  { %v494_v44 = vmul.f32 %v493_v43, %v1287_v15 }
 0xabb   :  { %v495_v45 = vadd.f32 %v494_v44, %v1293_v17 }
 0xb1c   :  { %v502_v41 = vpop.permute.xlu1 %501 }
 0xb1d   :  { %1057 = vmatmul.mubr.msk.f32.vlgmr.msra.gmra.mrb[4].mxu0 %vm49_vm1, %v502_v41 }
 0xb1e   :  { %1130 = vmatpush3.bf16.msra.mxu0 %v1259_v6  ;;  %1078 = vmatprep.mubr.msk.f32.mxu0 %vm1211_vm0, %v1212_v1 }
 0xb1f   :  { %1131 = vmatprep.subr.bf16.mxu0 %v1210_v0 }
 0xb22   :  { %1133 = vmatpush3.bf16.msra.mxu0 %v1265_v9 }
 0xbf0   :  { %v571_v46 = vpop.f32.mrb[4].mxu0 }
 0xbf1   :  { %v575_v47 = vadd.f32 %v571_v46, %v495_v45  ;;  %v1058_v48 = vpop.f32.mrb[5].mxu0 }
 0xbf3   :  { %1167 = vtanh.f32 %v575_v47 }
 0xbfd   :  { %v1168_v49 = vpop.eup %1167 }
 0xbfe   :  { %581 = vrot.lane.b32.xlu1 %v1168_v49, %s1214_s8  ;;  %v577_v50 = vadd.f32 1.0, %v1168_v49 }
 0xc00   :  { %v578_v51 = vmul.f32 0.5, %v577_v50 }
 0xc02   :  { %v579_v54 = vmul.f32 %v578_v51, %v476_v35 }
 0xc70   :  { %v582_v52 = vpop.permute.xlu1 %581 }
 0xc71   :  { %v584_v53 = vmul.f32 %v582_v52, %v578_v51 }
 0xc73   :  { %586 = vrot.lane.b32.xlu0 %v584_v53, %s1215_s1 }
 0xce5   :  { %v587_v55 = vpop.permute.xlu0 %586 }
 0xce6   :  { %v589_v56 = vadd.f32 %v587_v55, %v579_v54 }
 0xce8   :  { %1169 = vtanh.f32 %v589_v56 }
 0xcf2   :  { %v1170_v57 = vpop.eup %1169 }
 0xcf3   :  { %592 = vrot.lane.b32.xlu1 %v1170_v57, %s1214_s8 }
 0xcf7   :  { %600 = vperm.xlu1 %1150, %v958_v58  }
 0xd65   :  { %v593_v59 = vpop.permute.xlu1 %592 }
 0xd66   :  { %v595_v60 = vmul.f32 %v593_v59, %v578_v51 }
 0xd68   :  { %v613_v61 = vrot.slane %v595_v60, %v1281_v12 }
 0xd6a   :  { %614 = vrot.lane.b32.xlu0 %v613_v61, %s1215_s1 }
 0xd76   :  { %v601_v63 = vpop.permute.xlu1 %600 }
 0xd77   :  { %v606_v2 = vrot.slane %v601_v63, %v1281_v12 }
 0xd79   :  { %v607_v3 = vmul.f32 %v606_v2, %v1287_v15 }
 0xd7b   :  { %v608_v4 = vadd.f32 %v607_v3, %v1293_v17 }
 0xddc   :  { %v615_v62 = vpop.permute.xlu0 %614 }
 0xddd   :  { %1068 = vmatmul.mubr.msk.f32.vlgmr.msra.gmra.mrb[4].mxu1 %vm49_vm1, %v615_v62 }
 0xdde   :  { %1136 = vmatpush3.bf16.msra.mxu1 %v1259_v6  ;;  %1089 = vmatprep.mubr.msk.f32.mxu1 %vm1211_vm0, %v1212_v1 }
 0xddf   :  { %1137 = vmatprep.subr.bf16.mxu1 %v1210_v0 }
 0xde2   :  { %1139 = vmatpush3.bf16.msra.mxu1 %v1265_v9 }
 0xeb0   :  { %v684_v5 = vpop.f32.mrb[4].mxu1 }
 0xeb1   :  { %v688_v7 = vadd.f32 %v684_v5, %v608_v4  ;;  %v1069_v8 = vpop.f32.mrb[5].mxu1 }
 0xeb3   :  { %1171 = vtanh.f32 %v688_v7 }
 0xebd   :  { %v1172_v10 = vpop.eup %1171 }
 0xebe   :  { %694 = vrot.lane.b32.xlu0 %v1172_v10, %s1214_s8  ;;  %v690_v6 = vadd.f32 1.0, %v1172_v10 }
 0xec0   :  { %v691_v1 = vmul.f32 0.5, %v690_v6 }
 0xec2   :  { %v692_v9 = vmul.f32 %v691_v1, %v589_v56 }
 0xf30   :  { %v695_v11 = vpop.permute.xlu0 %694 }
 0xf31   :  { %v697_v0 = vmul.f32 %v695_v11, %v691_v1 }
 0xf33   :  { %699 = vrot.lane.b32.xlu1 %v697_v0, %s1215_s1 }
 0xfa5   :  { %v700_v13 = vpop.permute.xlu1 %699 }
 0xfa6   :  { %v702_v14 = vadd.f32 %v700_v13, %v692_v9 }
 0xfa8   :  { %1173 = vtanh.f32 %v702_v14 }
 0xfb2   :  { %v1174_v16 = vpop.eup %1173 }
 0xfb3   :  { %705 = vrot.lane.b32.xlu0 %v1174_v16, %s1214_s8 }
 0xfb7   :  { %713 = vperm.xlu0 %1149, %v960_v18  }
0x1025   :  { %v706_v19 = vpop.permute.xlu0 %705 }
0x1026   :  { %v708_v20 = vmul.f32 %v706_v19, %v691_v1 }
0x1028   :  { %v726_v21 = vrot.slane %v708_v20, %v1281_v12 }
0x102a   :  { %727 = vrot.lane.b32.xlu1 %v726_v21, %s1215_s1 }
0x1036   :  { %v714_v23 = vpop.permute.xlu0 %713 }
0x1037   :  { %v719_v24 = vrot.slane %v714_v23, %v1281_v12 }
0x1039   :  { %v720_v25 = vmul.f32 %v719_v24, %v1287_v15 }
0x103b   :  { %v721_v26 = vadd.f32 %v720_v25, %v1293_v17 }
0x109c   :  { %v728_v22 = vpop.permute.xlu1 %727 }
0x109d   :  { %1079 = vmatmul.mubr.msk.f32.vlgmr.msra.gmra.mrb[6].mxu0 %vm49_vm1, %v728_v22 }
0x1170   :  { %v797_v27 = vpop.f32.mrb[6].mxu0 }
0x1171   :  { %v801_v28 = vadd.f32 %v797_v27, %v721_v26  ;;  %v1080_v29 = vpop.f32.mrb[7].mxu0 }
0x1173   :  { %1175 = vtanh.f32 %v801_v28 }
0x117d   :  { %v1176_v30 = vpop.eup %1175 }
0x117e   :  { %807 = vrot.lane.b32.xlu1 %v1176_v30, %s1214_s8  ;;  %v803_v31 = vadd.f32 1.0, %v1176_v30 }
0x1180   :  { %v804_v32 = vmul.f32 0.5, %v803_v31 }
0x1182   :  { %v805_v35 = vmul.f32 %v804_v32, %v702_v14 }
0x11f0   :  { %v808_v33 = vpop.permute.xlu1 %807 }
0x11f1   :  { %v810_v34 = vmul.f32 %v808_v33, %v804_v32 }
0x11f3   :  { %812 = vrot.lane.b32.xlu0 %v810_v34, %s1215_s1 }
0x1265   :  { %v813_v36 = vpop.permute.xlu0 %812 }
0x1266   :  { %v815_v37 = vadd.f32 %v813_v36, %v805_v35 }
0x1268   :  { %1177 = vtanh.f32 %v815_v37 }
0x1272   :  { %v1178_v38 = vpop.eup %1177 }
0x1273   :  { %818 = vrot.lane.b32.xlu1 %v1178_v38, %s1214_s8 }
0x1277   :  { %826 = vperm.xlu1 %1150, %v962_v39  }
0x12e5   :  { %v819_v40 = vpop.permute.xlu1 %818 }
0x12e6   :  { %v821_v41 = vmul.f32 %v819_v40, %v804_v32 }
0x12e8   :  { %v839_v42 = vrot.slane %v821_v41, %v1281_v12 }
0x12ea   :  { %840 = vrot.lane.b32.xlu0 %v839_v42, %s1215_s1 }
0x12f6   :  { %v827_v44 = vpop.permute.xlu1 %826 }
0x12f7   :  { %v832_v45 = vrot.slane %v827_v44, %v1281_v12 }
0x12f9   :  { %v833_v46 = vmul.f32 %v832_v45, %v1287_v15 }
0x12fb   :  { %v834_v47 = vadd.f32 %v833_v46, %v1293_v17 }
0x135c   :  { %v841_v43 = vpop.permute.xlu0 %840 }
0x135d   :  { %1090 = vmatmul.mubr.msk.f32.vlgmr.msra.gmra.mrb[6].mxu1 %vm49_vm1, %v841_v43 }
0x1430   :  { %v910_v48 = vpop.f32.mrb[6].mxu1 }
0x1431   :  { %v914_v49 = vadd.f32 %v910_v48, %v834_v47  ;;  %v1091_v50 = vpop.f32.mrb[7].mxu1 }
0x1433   :  { %1179 = vtanh.f32 %v914_v49 }
0x143d   :  { %v1180_v51 = vpop.eup %1179 }
0x143e   :  { %920 = vrot.lane.b32.xlu0 %v1180_v51, %s1214_s8  ;;  %v916_v52 = vadd.f32 1.0, %v1180_v51 }
0x1440   :  { %v917_v53 = vmul.f32 0.5, %v916_v52 }
0x1442   :  { %v918_v56 = vmul.f32 %v917_v53, %v815_v37 }
0x14b0   :  { %v921_v54 = vpop.permute.xlu0 %920 }
0x14b1   :  { %v923_v55 = vmul.f32 %v921_v54, %v917_v53 }
0x14b3   :  { %925 = vrot.lane.b32.xlu1 %v923_v55, %s1215_s1 }
0x1525   :  { %v926_v57 = vpop.permute.xlu1 %925 }
0x1526   :  { %v928_v58 = vadd.f32 %v926_v57, %v918_v56 }
0x1528   :  { %1181 = vtanh.f32 %v928_v58 }
0x1532   :  { %v1182_v15 = vpop.eup %1181 }
0x1533   :  { %931 = vrot.lane.b32.xlu0 %v1182_v15, %s1214_s8 }
0x15a5   :  { %v932_v17 = vpop.permute.xlu0 %931 }
0x15a6   :  { %v934_v59 = vmul.f32 %v932_v17, %v917_v53 }
0x15a8   :  { %v939_v60 = vrot.slane %v934_v59, %v1281_v12 }
0x15aa   :  { %940 = vrot.lane.b32.xlu1 %v939_v60, %s1215_s1 }
0x161c   :  { %v941_v61 = vpop.permute.xlu1 %940 }
0x161d   :  { %944 = vst.msk [vmem:[%s1420_s4] sm:$0x1] %vm943_vm2, %v941_v61 }
0x161e   :  { %949 = vsyncpa [#allocation3], 1 }

</bundles_post_ra>
